<compile_context>
chip_gen: v7x
topology: tpu7x:2x2x1
jax: 0.10.0
libtpu: 0.0.40
codegen_flags: <defaults>
</compile_context>

<pallas_src>
import jax
import jax.numpy as jnp
from jax import lax
from jax.experimental import pallas as pl
from jax.experimental.pallas import tpu as pltpu


def _round_up(x, m):
    return ((x + m - 1) // m) * m


# ----------------------------------------------------------------------------
# Pallas kernel: one MXU contraction per (mc, b, pixel-tile) + f32 bias add
# ----------------------------------------------------------------------------
def _var_conv_matmul_kernel(w_ref, p_ref, b_ref, o_ref):
    # w_ref: (Cout_pad, K_pad)  bf16   sampled weight, im2col (cin,kh,kw) order
    # p_ref: (K_pad, TP)        bf16   im2col patches, pixels lane-dense
    # b_ref: (Cout_pad, 1)      f32    per-(mc, b) sampled bias
    # o_ref: (Cout_pad, TP)            output block, pixels on lanes (NCHW-flat)
    acc = jnp.dot(w_ref[...], p_ref[...], preferred_element_type=jnp.float32)
    o_ref[...] = (acc + b_ref[...]).astype(o_ref.dtype)


def variational_conv2d_forward(x_mc, w_mc, b_mc, *, padding=1,
                               max_pixel_tile=8192):
    """Fused forward for all MC samples in one pallas_call.

    x_mc: (MC, B, Cin, H, W)        stacked inputs (one per MC sample)
    w_mc: (MC, Cout, Cin, KH, KW)   one sampled weight per MC sample
    b_mc: (MC, B, Cout)             one sampled bias per (MC sample, batch elem)
    returns (MC, B, Cout, Ho, Wo)
    """
    MC, B, Cin, H, W = x_mc.shape
    _, Cout, Cin_w, KH, KW = w_mc.shape
    assert Cin == Cin_w
    # stride=1 / dilation=1 only (matches the PyTorch test configuration).

    Hp, Wp = H + 2 * padding, W + 2 * padding
    Ho, Wo = Hp - KH + 1, Wp - KW + 1
    P = Ho * Wo                                   # pixels per image
    K = Cin * KH * KW                             # contraction length

    K_pad = _round_up(K, 16)                      # bf16 sublanes pack in pairs
    Cout_pad = _round_up(Cout, 8)                 # f32 output sublane tile

    # Pixel-axis tiling (lane dim): whole image per step when it fits, else
    # fixed lane-dense chunks so the per-step VMEM stays bounded (v7x 64 MiB).
    if P <= max_pixel_tile:
        TP = _round_up(P, 128)
        P_pad = TP
    else:
        TP = max_pixel_tile                       # multiple of 128
        P_pad = _round_up(P, TP)
    PT = P_pad // TP

    out_dtype = x_mc.dtype

    # ---- layout plumbing (wrapper, one bf16 pass over x) --------------------
    # bf16 cast first: halves the HBM traffic of pad + im2col; the MXU rounds
    # to bf16 anyway so numerics are unchanged.
    x_bf = x_mc.astype(jnp.bfloat16)
    x_hal = jnp.pad(
        x_bf, ((0, 0), (0, 0), (0, 0), (padding, padding), (padding, padding)))
    # im2col: K ordering is (cin, kh, kw) to match w.reshape(Cout, Cin*KH*KW)
    cols = []
    for kh in range(KH):                          # static, tiny loop
        for kw in range(KW):
            cols.append(x_hal[:, :, :, kh:kh + Ho, kw:kw + Wo])
    patches = jnp.stack(cols, axis=3)             # (MC, B, Cin, KH*KW, Ho, Wo)
    patches = patches.reshape(MC, B, K, P)        # (MC, B, K, pixels)
    patches = jnp.pad(
        patches, ((0, 0), (0, 0), (0, K_pad - K), (0, P_pad - P)))

    # sampled weights -> (Cout, K) matrix per MC sample, bf16, zero-padded
    w_mat = w_mc.reshape(MC, Cout, K)
    w_mat = jnp.pad(w_mat, ((0, 0), (0, Cout_pad - Cout), (0, K_pad - K)))
    w_mat = w_mat.astype(jnp.bfloat16)

    # per-(mc, b) sampled bias as an f32 column (broadcast over pixel lanes)
    b_col = jnp.pad(b_mc.astype(jnp.float32),
                    ((0, 0), (0, 0), (0, Cout_pad - Cout)))[..., None]

    out = pl.pallas_call(
        _var_conv_matmul_kernel,
        out_shape=jax.ShapeDtypeStruct((MC, B, Cout_pad, P_pad), out_dtype),
        grid=(MC, B, PT),
        in_specs=[
            # one sampled weight matrix per MC sample (resident across b, pt)
            pl.BlockSpec((None, Cout_pad, K_pad),
                         lambda mc, b, pt: (mc, 0, 0)),
            # lane-dense patch slab for this (mc, b, pixel tile)
            pl.BlockSpec((None, None, K_pad, TP),
                         lambda mc, b, pt: (mc, b, 0, pt)),
            # one sampled bias column per (mc, b)
            pl.BlockSpec((None, None, Cout_pad, 1),
                         lambda mc, b, pt: (mc, b, 0, 0)),
        ],
        out_specs=pl.BlockSpec((None, None, Cout_pad, TP),
                               lambda mc, b, pt: (mc, b, 0, pt)),
        compiler_params=pltpu.CompilerParams(
            # every grid point writes a disjoint output block -> all parallel
            dimension_semantics=("parallel", "parallel", "parallel")),
    )(w_mat, patches, b_col)

    # strip padding only if any was added (none for the test shapes); the
    # output is already NCHW-flat, so only a metadata reshape remains.
    if Cout_pad != Cout or P_pad != P:
        out = out[:, :, :Cout, :P]
    return out.reshape(MC, B, Cout, Ho, Wo)


# ----------------------------------------------------------------------------
# Variational layer wrapper (parameter setup / posterior sampling = glue)
# ----------------------------------------------------------------------------
class VariationalConv2dPallas:
    def __init__(self, key, in_channels, out_channels, kernel_size, padding=1):
        self.padding = padding
        self.gradient_variance_reduction_method = "none"
        k_wmu, k_bmu = jax.random.split(key)
        w_shape = (out_channels, in_channels, kernel_size, kernel_size)
        fan_in = in_channels * kernel_size * kernel_size
        bound = 1.0 / jnp.sqrt(jnp.float32(fan_in))
        # VI_init-style parameters: mu ~ U(-bound, bound), rho = -5
        self.w_mu = jax.random.uniform(k_wmu, w_shape, jnp.float32, -bound, bound)
        self.w_rho = jnp.full(w_shape, -5.0, jnp.float32)
        self.b_mu = jax.random.uniform(k_bmu, (out_channels,), jnp.float32,
                                       -bound, bound)
        self.b_rho = jnp.full((out_channels,), -5.0, jnp.float32)

    def sample_weights(self, key, n):
        eps = jax.random.normal(key, (n,) + self.w_mu.shape, jnp.float32)
        sigma = jax.nn.softplus(self.w_rho)
        return self.w_mu[None] + sigma[None] * eps     # (n, Cout, Cin, KH, KW)

    def sample_biases(self, key, n):
        eps = jax.random.normal(key, (n,) + self.b_mu.shape, jnp.float32)
        sigma = jax.nn.softplus(self.b_rho)
        return self.b_mu[None] + sigma[None] * eps     # (n, Cout)

    def __call__(self, key, inputs):
        # forward with gradient_variance_reduction_method == 'none'
        return_as_list = isinstance(inputs, list)
        if not return_as_list:
            inputs = [inputs]
        MC = len(inputs)
        B = inputs[0].shape[0]
        kw_key, kb_key = jax.random.split(key)
        weights = self.sample_weights(kw_key, MC)          # (MC, Cout, Cin, K, K)
        biases = self.sample_biases(kb_key, MC * B)        # (MC*B, Cout)
        x_mc = jnp.stack(inputs, axis=0)                   # (MC, B, Cin, H, W)
        out = variational_conv2d_forward(
            x_mc, weights, biases.reshape(MC, B, -1), padding=self.padding)
        outs = [out[i] for i in range(MC)]
        return outs if return_as_list else outs[0]


# ----------------------------------------------------------------------------
def _reference(x_nchw, w_oihw, bias_per_batch, padding):
    # bf16-rounded inputs + f32 accumulation, matching the kernel's MXU path
    y = lax.conv_general_dilated(
        x_nchw.astype(jnp.bfloat16), w_oihw.astype(jnp.bfloat16),
        window_strides=(1, 1),
        padding=((padding, padding), (padding, padding)),
        dimension_numbers=("NCHW", "OIHW", "NCHW"),
        preferred_element_type=jnp.float32)
    return y + bias_per_batch[:, :, None, None]


if __name__ == "__main__":
    key = jax.random.PRNGKey(0)
    k_param, k_x, k_fwd, k_x2, k_fwd2 = jax.random.split(key, 5)

    B, Cin, H, W = 2, 4, 16, 16
    Cout, K, pad = 8, 3, 1

    layer = VariationalConv2dPallas(k_param, Cin, Cout, K, padding=pad)

    # --- single-tensor path (MC = 1) ---
    x = jax.random.normal(k_x, (B, Cin, H, W), jnp.float32)
    out = layer(k_fwd, x)                                    # (B, Cout, H, W)
    out = jax.block_until_ready(out)

    kw_key, kb_key = jax.random.split(k_fwd)
    w_s = layer.sample_weights(kw_key, 1)[0]
    b_s = layer.sample_biases(kb_key, B)                     # (B, Cout)
    ref = _reference(x, w_s, b_s, pad)
    assert out.shape == (B, Cout, H, W)
    assert jnp.allclose(out, ref, atol=2e-3, rtol=2e-3), \
        float(jnp.max(jnp.abs(out - ref)))

    # --- list path (MC = 2) -> one fused pallas_call over the MC grid axis ---
    xs = [x, jax.random.normal(k_x2, (B, Cin, H, W), jnp.float32)]
    outs = layer(k_fwd2, xs)
    outs = [jax.block_until_ready(o) for o in outs]

    kw_key2, kb_key2 = jax.random.split(k_fwd2)
    ws = layer.sample_weights(kw_key2, 2)
    bs = layer.sample_biases(kb_key2, 2 * B).reshape(2, B, Cout)
    for i in range(2):
        ref_i = _reference(xs[i], ws[i], bs[i], pad)
        assert outs[i].shape == (B, Cout, H, W)
        assert jnp.allclose(outs[i], ref_i, atol=2e-3, rtol=2e-3), \
            float(jnp.max(jnp.abs(outs[i] - ref_i)))

    print("KERNEL_OK")
</pallas_src>

<mosaic_0001>
module attributes {stable_mosaic.version = 11 : i64} {
  func.func @_var_conv_matmul_kernel(%arg0: i32, %arg1: i32, %arg2: i32, %arg3: memref<1x8x48xbf16, #tpu.memory_space<vmem>>, %arg4: memref<1x1x48x256xbf16, #tpu.memory_space<vmem>>, %arg5: memref<1x1x8x1xf32, #tpu.memory_space<vmem>>, %arg6: memref<1x1x8x256xf32, #tpu.memory_space<vmem>>) attributes {dimension_semantics = [#tpu.dimension_semantics<parallel>, #tpu.dimension_semantics<parallel>, #tpu.dimension_semantics<parallel>], iteration_bounds = array<i64: 1, 2, 1>, scalar_prefetch = 0 : i64, scratch_operands = 0 : i64, tpu.core_type = #tpu.core_type<tc>, window_params = [{transform_indices = @transform_0, window_bounds = array<i64: 1, 8, 48>}, {transform_indices = @transform_1, window_bounds = array<i64: 1, 1, 48, 256>}, {transform_indices = @transform_2, window_bounds = array<i64: 1, 1, 8, 1>}, {transform_indices = @transform_3, window_bounds = array<i64: 1, 1, 8, 256>}]} {
    %c0 = arith.constant 0 : index
    %c0_0 = arith.constant 0 : index
    %c0_1 = arith.constant 0 : index
    %0 = vector.load %arg3[%c0, %c0_0, %c0_1] : memref<1x8x48xbf16, #tpu.memory_space<vmem>>, vector<1x8x48xbf16>
    %1 = vector.shape_cast %0 : vector<1x8x48xbf16> to vector<8x48xbf16>
    %c0_2 = arith.constant 0 : index
    %c0_3 = arith.constant 0 : index
    %c0_4 = arith.constant 0 : index
    %c0_5 = arith.constant 0 : index
    %2 = vector.load %arg4[%c0_2, %c0_3, %c0_4, %c0_5] : memref<1x1x48x256xbf16, #tpu.memory_space<vmem>>, vector<1x1x48x256xbf16>
    %3 = vector.shape_cast %2 : vector<1x1x48x256xbf16> to vector<48x256xbf16>
    %cst = arith.constant dense<0.000000e+00> : vector<8x256xf32>
    %4 = tpu.matmul %1, %3, %cst {dimension_numbers = #tpu.dot_dimension_numbers<[1], [0], [0], [1], [0, 0, 1, 1], [], []>} : vector<8x48xbf16>, vector<48x256xbf16>, vector<8x256xf32> -> vector<8x256xf32>
    %c0_6 = arith.constant 0 : index
    %c0_7 = arith.constant 0 : index
    %c0_8 = arith.constant 0 : index
    %c0_9 = arith.constant 0 : index
    %5 = vector.load %arg5[%c0_6, %c0_7, %c0_8, %c0_9] : memref<1x1x8x1xf32, #tpu.memory_space<vmem>>, vector<1x1x8x1xf32>
    %6 = vector.shape_cast %5 : vector<1x1x8x1xf32> to vector<8x1xf32>
    %7 = vector.broadcast %6 : vector<8x1xf32> to vector<8x256xf32>
    %8 = arith.addf %4, %7 : vector<8x256xf32>
    %c0_10 = arith.constant 0 : index
    %c0_11 = arith.constant 0 : index
    %c0_12 = arith.constant 0 : index
    %c0_13 = arith.constant 0 : index
    %9 = vector.load %arg6[%c0_10, %c0_11, %c0_12, %c0_13] : memref<1x1x8x256xf32, #tpu.memory_space<vmem>>, vector<1x1x8x256xf32>
    %10 = vector.shape_cast %9 : vector<1x1x8x256xf32> to vector<8x256xf32>
    %11 = vector.shape_cast %8 : vector<8x256xf32> to vector<1x1x8x256xf32>
    tpu.vector_store %arg6[%c0_10, %c0_11, %c0_12, %c0_13], %11 {strides = array<i32>} : memref<1x1x8x256xf32, #tpu.memory_space<vmem>>, vector<1x1x8x256xf32>,
    return
  }
  func.func @transform_0(%arg0: i32, %arg1: i32, %arg2: i32) -> (i32, i32, i32) {
    %c0_i32 = arith.constant 0 : i32
    %c0_i32_0 = arith.constant 0 : i32
    %c0_i32_1 = arith.constant 0 : i32
    return %arg0, %c0_i32, %c0_i32_0 : i32, i32, i32
  }
  func.func @transform_1(%arg0: i32, %arg1: i32, %arg2: i32) -> (i32, i32, i32, i32) {
    %c0_i32 = arith.constant 0 : i32
    %c0_i32_0 = arith.constant 0 : i32
    return %arg0, %arg1, %c0_i32, %arg2 : i32, i32, i32, i32
  }
  func.func @transform_2(%arg0: i32, %arg1: i32, %arg2: i32) -> (i32, i32, i32, i32) {
    %c0_i32 = arith.constant 0 : i32
    %c0_i32_0 = arith.constant 0 : i32
    %c0_i32_1 = arith.constant 0 : i32
    return %arg0, %arg1, %c0_i32, %c0_i32_0 : i32, i32, i32, i32
  }
  func.func @transform_3(%arg0: i32, %arg1: i32, %arg2: i32) -> (i32, i32, i32, i32) {
    %c0_i32 = arith.constant 0 : i32
    %c0_i32_0 = arith.constant 0 : i32
    return %arg0, %arg1, %c0_i32, %arg2 : i32, i32, i32, i32
  }
}

</mosaic_0001>

<bundles_post_ra>
// kernel: tpu_custom_call.1
= control target key start
LH: loop header
LB: loop body
LE: loop exit
PB: predicated region body
PF: predicated region fallthrough
CT: control target
= control target key end

     0   :  { %8 = vsyncpa [#allocation3], 0  ;;  %s925_s0 = inlined_call_operand.vmem [shape: bf16[1,8,48], index: 0, kind: input, shape index: {}]   ;;  %s926_s1 = inlined_call_operand.hbm [shape: bf16[1,2,48,256], index: 1, kind: input, shape index: {}]   ;;  %s927_s2 = inlined_call_operand.vmem [shape: f32[1,2,8,1], index: 2, kind: input, shape index: {}]   ;;  %s928_s3 = inlined_call_operand.hbm [shape: f32[1,2,8,256], index: 3, kind: output, shape index: {}]  }
   0x1   :  { %10 = vsyncpa [#allocation3 + $0x1], 0 }
   0x2   :  { %11 = vsyncpa [#allocation4], 0 }
   0x3   :  { %13 = vsyncpa [#allocation4 + $0x1], 0  ;;  %s743_s12 = smov 0   ;;  %s745_s13 = smov 0  }
   0x4   :  { %s747_s14 = smov 0   ;;  %s749_s15 = smov 0  }
   0x5   :  { %s751_s16 = smov 0   ;;  %s753_s17 = smov 0  }
   0x6 LB: > { %s504_s18 = sadd.s32 4294967295, %s716_s17   ;;  %s505_s19 = sadd.s32 4294967294, %s716_s17   ;;  %s716_s17 = sphi %s753_s17, %s19_s17   ;;  %s712_s16 = sphi %s751_s16, %s943_s16   ;;  %s708_s15 = sphi %s749_s15, %s942_s15   ;;  %s704_s14 = sphi %s747_s14, %s941_s14   ;;  %s700_s13 = sphi %s745_s13, %s940_s13   ;;  %s696_s12 = sphi %s743_s12, %s939_s12  }
   0x7   : > { %s34_s20 = sadd.s32 1, %s712_s16  ;;  %s75_s21 = sadd.s32 1, %s704_s14 }
   0x8   : > { %p36_p0 = scmp.ge.s32.totalorder %s34_s20, 2  ;;  %p82_p1 = scmp.ne.s32.totalorder %s704_s14, %s700_s13 }
   0x9   : > { %p83_p2 = scmp.eq.s32.totalorder %s716_s17, 0  ;;  %p88_p3 = scmp.ne.s32.totalorder %s700_s13, %s696_s12 }
   0xa   : > { %s945_s20 = smov (%p36_p0, %s34_s20), 0  ;;  %p89_p5 = scmp.eq.s32.totalorder %s504_s18, 0 }
   0xb   : > { %p784_p4 = por %p83_p2, %p82_p1  ;;  %s69_s23 = ssub.s32 %s712_s16, %s945_s20 }
   0xc   : > { %p144_p6 = scmp.eq.s32.totalorder %s504_s18, 1  ;;  %p73_p7 = scmp.eq.s32.totalorder %s69_s23, 0 }
   0xd   : > { %p790_p8 = por %p89_p5, %p88_p3  ;;  %p150_p10 = scmp.eq.s32.totalorder %s505_s19, 1 }
   0xe   : > { %p794_p9 = por %p144_p6, %p82_p1  ;;  %p541_p13 = scmp.lt.s32.totalorder %s716_s17, 2 }
   0xf   : > { %s799_s26 = scalar_select %p73_p7, %s704_s14, %s75_s21  }
  0x10   : > { %s932_s25 = scalar_select %p794_p9, 1, 0 }
  0x11   : > { %p801_p11 = por %p150_p10, %p88_p3  ;;  %s177_s28 = sand.u32 1, %s704_s14  }
  0x12   : > { %s526_s29 = smul.u32 48, %s177_s28  ;;  %p811_p0 = pnand %p541_p13, %p784_p4 }
  0x13   : > { %s933_s27 = scalar_select %p801_p11, 1, 0 }
  0x14   : > { %s527_s30 = smul.u32 768, %s712_s16  ;;  %s181_s8 = scalar_lea.vmem [#allocation2], %s526_s29 }
  0x15   : > { %s192_s9 = sshll.u32 %s181_s8, 4  ;;  %s823_s10 = scalar_lea.sflag [#allocation3], %s177_s28  ;;  %s820_s9 = int_to_ptr.vmem [resolvable:$true] %s192_s9 }
  0x16   : > { %s818_s7 = scalar_lea.hbm %s926_s1, %s527_s30  ;;  %p606_p3 = pneg %p811_p0 }
  0x17   : > { %s604_s11 = scalar_lea.hbm %s818_s7, 768  ;;  %s609_s21 = scalar_lea.hbm %s926_s1, 1536 }
  0x18   : > { %p605_p2 = scmp.ne.s32.totalorder %s818_s7, %s604_s11  ;;  %p610_p6 = scmp.lt.u32.totalorder %s818_s7, %s926_s1 }
  0x19   : > { %p611_p7 = scmp.lt.u32.totalorder %s609_s21, %s604_s11  ;;  %p613_p13 = scmp.lt.u32.totalorder %s604_s11, %s818_s7 }
  0x1a   : > { %p607_p4 = pnand %p606_p3, %p605_p2 }
  0x1b   : > { %p612_p10 = por %p611_p7, %p610_p6 }
  0x1c   : > { %p608_p5 = pneg %p607_p4 }
  0x1d   : > { %p614_p12 = por %p613_p13, %p612_p10 }
  0x1f   : > { %p615_p1 = pnand %p614_p12, %p608_p5 }
  0x21   : > { %618 = shalt.err (!%p615_p1)
}
  0x22   : > { %s619_s28 = scalar_lea.vmem %s820_s9, 768  ;;  %s718_s29 = smov [#allocation2]  }
  0x23   : > { %p620_p2 = scmp.ne.s32.totalorder %s820_s9, %s619_s28  ;;  %s624_s30 = sshll.u32 %s718_s29, 4  ;;  %s625_s30 = int_to_ptr.vmem [resolvable:$false] %s624_s30 }
  0x24   : > { %s626_s5 = scalar_lea.vmem %s625_s30, 1536  ;;  %p627_p9 = scmp.lt.s32.totalorder %s820_s9, %s625_s30 }
  0x25   : > { %p622_p4 = pnand %p620_p2, %p606_p3  ;;  %p628_p6 = scmp.lt.s32.totalorder %s626_s5, %s619_s28 }
  0x27   : > { %p623_p11 = pneg %p622_p4  ;;  %p629_p7 = por %p628_p6, %p627_p9 }
  0x29   : > { %p630_p10 = pnand %p629_p7, %p623_p11 }
  0x2b   : > { %633 = shalt.err (!%p630_p10)
}
  0x2c   : > { %s719_s6 = smov 128   ;;  %s720_s8 = smov 8  }
  0x2d   : > { %536 = dma.hbm_to_vmem [thread:$0]  (!%p811_p0), %s818_s7, 768, %s820_s9, %s823_s10, %s719_s6, %s719_s6, %s720_s8  }
  0x2e   : > { %p211_p12 = scmp.lt.s32.totalorder %s716_s17, 3  ;;  %p935_p1 = scmp.ge.s32.totalorder %s716_s17, 1 }
  0x30   : > { %p212_p3 = pnand %p935_p1, %p211_p12 }
  0x31   : > { %s855_s11 = sand.u32 (!%p212_p3), 1, %s700_s13  }
  0x32   : > { %215 = sbr.rel (%p212_p3) target bundleno = 301 (0x12d), region = 32  ;;  %s218_s19 = scalar_lea.sflag (!%p212_p3), [#allocation3], %s855_s11 }
  0x33   : > { %s528_s18 = smul.u32 (!%p212_p3), 48, %s855_s11 }
  0x35   : > { %s221_s21 = scalar_lea.vmem (!%p212_p3), [#allocation2], %s528_s18 }
  0x39   : > { %687 = dma.done.wait (%p790_p8), %s218_s19, 768  }
  0x3a   : > { %689 = vsyncadd (%p790_p8), %s218_s19, 4294966528  ;;  %p263_p9 = scmp.lt.s32.totalorder %s708_s15, 1  ;;  %v721_v0 = vmov 0   ;;  %v595_v1 = vld [vmem:[%s221_s21 + $0x4] ss:$8 sps:$4 sm:$0xff]   ;;  %vm314_vm0 = vcmask 392192  }
  0x3b   : > { %350 = vmatprep.mubr.bf16.mxu0 %v721_v0  ;;  %594 = vset.pattern.permute.xlu0 %v721_v0  ;;  %v597_v2 = vld [vmem:[%s221_s21] ss:$8 sps:$4 sm:$0xff]   ;;  %v598_v3 = vld [vmem:[%s221_s21 + $0x14] ss:$8 sps:$4 sm:$0xff]   ;;  %v600_v4 = vld [vmem:[%s221_s21 + $0x10] ss:$8 sps:$4 sm:$0xff]  }
  0x3c   : > { %s264_s4 = scalar_select %p263_p9, %s708_s15, 1  ;;  %318 = vmatprep.subr.bf16.mxu0 %v595_v1  ;;  %v601_v5 = vld [vmem:[%s221_s21 + $0x24] ss:$8 sps:$4 sm:$0xff]   ;;  %v603_v7 = vld [vmem:[%s221_s21 + $0x20] ss:$8 sps:$4 sm:$0xff]  }
  0x3d   : > { %319 = vmatpush1.bf16.msra.mxu0 %v597_v2  ;;  %v271_v8 = vld [vmem:[%s925_s0] sm:$0xf]  ;;  %s511_s28 = sshll.u32 %s855_s11, 4  ;;  %s525_s29 = sshll.u32 %s708_s15, 8 }
  0x3e   : > { %s512_s7 = sshll.u32 %s264_s4, 3  ;;  %320 = vmatprep.subr.bf16.mxu0 %v598_v3  ;;  %s255_s30 = scalar_lea.vmem [#allocation5], %s511_s28 }
  0x3f   : > { %s268_s22 = scalar_lea.vmem %s927_s2, %s512_s7  ;;  %s380_s5 = sshll.u32 %s255_s30, 4  ;;  %s878_s5 = int_to_ptr.vmem [resolvable:$true] %s380_s5 }
  0x40   : > { %v278_v6 = vld [vmem:[%s268_s22] sm:$0xff]  ;;  %s876_s18 = scalar_lea.hbm %s928_s3, %s525_s29  ;;  %s362_s15 = scalar_lea.sflag [#allocation4], %s855_s11 }
  0x41   : > { %281 = vperm.xlu0 %594, %v278_v6   ;;  %321 = vmatpush1.bf16.msra.mxu0 %v600_v4  ;;  %s634_s19 = scalar_lea.vmem %s878_s5, 256  ;;  %p936_p11 = scmp.ne.s32.totalorder %s932_s25, 0 }
  0x42   : > { %322 = vmatprep.subr.bf16.mxu0 %v601_v5  ;;  %p635_p8 = scmp.ne.s32.totalorder %s878_s5, %s634_s19  ;;  %s722_s21 = smov [#allocation5]  }
  0x43   : > { %s638_s4 = sshll.u32 %s722_s21, 4  ;;  %s639_s4 = int_to_ptr.vmem [resolvable:$false] %s638_s4 }
  0x44   : > { %p636_p0 = pnand %p635_p8, %p936_p11  ;;  %s640_s7 = scalar_lea.vmem %s639_s4, 512 }
  0x45   : > { %323 = vmatpush1.bf16.msra.mxu0 %v603_v7  ;;  %p641_p13 = scmp.lt.s32.totalorder %s878_s5, %s639_s4  ;;  %p642_p2 = scmp.lt.s32.totalorder %s640_s7, %s634_s19 }
  0x46   : > { %p637_p5 = pneg %p636_p0 }
  0x47   : > { %p643_p4 = por %p642_p2, %p641_p13 }
  0x48   : > { %519 = vmatmul.mubr.msk.bf16.vlgmr.msra.gmra.mrb[0].mxu0 %vm314_vm0, %v271_v8 }
  0x49   : > { %p644_p6 = pnand %p643_p4, %p637_p5 }
  0xc0   : > { %v282_v9 = vpop.permute.xlu0 %281 }
 0x11b   : > { %v352_v10 = vpop.f32.mrb[0].mxu0 }
 0x11c   : > { %v353_v11 = vadd.f32 %v352_v10, %v282_v9  ;;  %v354_v12 = vpop.f32.mrb[1].mxu0 }
 0x11d   : > { %v355_v13 = vadd.f32 %v354_v12, %v282_v9  ;;  %v356_v14 = vpop.f32.mrb[2].mxu0 }
 0x11e   : > { %359 = vst [vmem:[%s255_s30] sm:$0xff] %v353_v11  ;;  %v357_v15 = vpop.f32.mrb[3].mxu0 }
 0x11f   : > { %360 = vst [vmem:[%s255_s30 + $0x8] sm:$0xff] %v355_v13 }
 0x120   : > { %647 = shalt.err (!%p644_p6)
}
 0x121   : > { %s648_s11 = scalar_lea.hbm %s876_s18, 256  ;;  %s652_s22 = scalar_lea.hbm %s928_s3, 512 }
 0x122   : > { %p649_p7 = scmp.ne.s32.totalorder %s876_s18, %s648_s11  ;;  %p653_p1 = scmp.lt.u32.totalorder %s876_s18, %s928_s3 }
 0x123   : > { %p654_p3 = scmp.lt.u32.totalorder %s652_s22, %s648_s11  ;;  %p656_p8 = scmp.lt.u32.totalorder %s648_s11, %s876_s18 }
 0x124   : > { %p650_p10 = pnand %p649_p7, %p936_p11 }
 0x125   : > { %p655_p9 = por %p654_p3, %p653_p1 }
 0x126   : > { %p651_p12 = pneg %p650_p10 }
 0x127   : > { %p657_p0 = por %p656_p8, %p655_p9 }
 0x129   : > { %p658_p5 = pnand %p657_p0, %p651_p12 }
 0x12b   : > { %661 = shalt.err (!%p658_p5)
}
 0x12c   : > { %531 = dma.vmem_to_hbm [thread:$0]  (%p936_p11), %s878_s5, 256, %s876_s18, %s362_s15  }
 0x12d PF: > { %s392_s28 = sand.u32 1, %s696_s12   ;;  %p937_p13 = scmp.ne.s32.totalorder %s933_s27, 0 }
 0x12e   : > { %p938_p2 = scmp.ge.s32.totalorder %s716_s17, 2  ;;  %s393_s29 = scalar_lea.sflag [#allocation4], %s392_s28 }
 0x130   : > { %p538_p4 = pnand %p938_p2, %p937_p13 }
 0x132   : > { %691 = dma.done.wait (!%p538_p4), %s393_s29, 256  }
 0x133   : > { %693 = vsyncadd (!%p538_p4), %s393_s29, 4294967040  ;;  %s19_s17 = sadd.s32 1, %s716_s17   ;;  %s939_s12 = smov %s700_s13 }
 0x134   : > { %p16_p6 = scmp.ge.s32.totalorder %s19_s17, 4   ;;  %s940_s13 = smov %s704_s14 }
 0x135   : > { %s941_s14 = smov %s799_s26  ;;  %s942_s15 = smov %s712_s16 }
 0x136   : > { %s943_s16 = smov %s945_s20  ;;  %18 = sbr.rel (!%p16_p6) target bundleno = 6 (0x6), region = 83 }
 0x13d   :  { %398 = vsyncpa [#allocation3], 1 }
 0x13e   :  { %400 = vsyncpa [#allocation3 + $0x1], 1 }
 0x13f   :  { %401 = vsyncpa [#allocation4], 1 }
 0x140   :  { %403 = vsyncpa [#allocation4 + $0x1], 1 }

</bundles_post_ra>
